<compile_context>
chip_gen: v7x
topology: tpu7x:2x2x1
jax: 0.10.0
libtpu: 0.0.40
codegen_flags: <defaults>
</compile_context>

<pallas_src>
import jax
import jax.numpy as jnp
from jax.experimental import pallas as pl
from jax.experimental.pallas import tpu as pltpu


def _regressor_kernel(pool_ref, adj_ref, h_ref,
                      w1_ref, b1_ref, w2_ref, b2_ref,
                      wr1_ref, br1_ref, wr2_ref, br2_ref,
                      out_ref):
    a = adj_ref[...]                       # (Bt, N, N)  row-normalized, bf16
    h = h_ref[...]                         # (Bt, N, Din) node features, bf16
    bt, n, _ = a.shape
    din = h.shape[-1]

    # --- GCN layer 1: mean over in-neighbors (A_norm @ h), Linear, ReLU ---
    m = jnp.einsum("bij,bjd->bid", a, h, preferred_element_type=jnp.float32)
    m = m.reshape(bt * n, din)             # flatten graphs -> M = Bt*N sublanes
    h1 = jnp.maximum(
        jnp.dot(m.astype(w1_ref.dtype), w1_ref[...],
                preferred_element_type=jnp.float32) + b1_ref[...],
        0.0)                               # (Bt*N, H1) f32

    # --- GCN layer 2 ---
    h1b = h1.reshape(bt, n, -1).astype(a.dtype)
    m2 = jnp.einsum("bij,bjd->bid", a, h1b, preferred_element_type=jnp.float32)
    m2 = m2.reshape(bt * n, -1)
    h2 = jnp.maximum(
        jnp.dot(m2.astype(w2_ref.dtype), w2_ref[...],
                preferred_element_type=jnp.float32) + b2_ref[...],
        0.0)                               # (Bt*N, H1) f32

    # --- dgl.mean_nodes fused as an MXU matmul: (Bt, Bt*N) @ (Bt*N, H1) ---
    hg = jnp.dot(pool_ref[...], h2, preferred_element_type=jnp.float32)  # (Bt, H1)

    # --- regression head (f32); wr2/br2 pre-padded to 128 lanes -> dense store ---
    hidden = jnp.dot(hg, wr1_ref[...],
                     preferred_element_type=jnp.float32) + br1_ref[...]   # (Bt, H2)
    out = jnp.dot(hidden, wr2_ref[...],
                  preferred_element_type=jnp.float32) + br2_ref[...]      # (Bt, 128)
    out_ref[...] = out


def regressor_forward(adj, h, params, *, bt=8, compute_dtype=jnp.bfloat16):
    """adj: [B, N, N] row-normalized (self-loops assumed so in-degree >= 1).
    h: [B, N, in_dim].  Returns [B, out_size] in float32."""
    B, N, Din = h.shape
    H1 = params["w1"].shape[1]
    H2 = params["wr1"].shape[1]
    Dout = params["wr2"].shape[1]
    OUTPAD = 128
    assert Dout <= OUTPAD

    # Pad the batch so every grid step processes exactly `bt` graphs.
    b_pad = pl.cdiv(B, bt) * bt
    if b_pad != B:
        pad = b_pad - B
        adj = jnp.pad(adj, ((0, pad), (0, 0), (0, 0)))
        h = jnp.pad(h, ((0, pad), (0, 0), (0, 0)))

    # bf16 operands for the MXU-heavy matmuls (halves adj/h DMA bytes);
    # f32 biases / head / accumulation.
    adj_c = adj.astype(compute_dtype)
    h_c = h.astype(compute_dtype)
    w1 = params["w1"].astype(compute_dtype)
    w2 = params["w2"].astype(compute_dtype)
    b1 = params["b1"].astype(jnp.float32)
    b2 = params["b2"].astype(jnp.float32)
    wr1 = params["wr1"].astype(jnp.float32)
    br1 = params["br1"].astype(jnp.float32)
    # Zero-pad the final head to 128 output lanes so the kernel's store is
    # a full, unmasked (Bt, 128) slab.
    wr2p = jnp.zeros((H2, OUTPAD), jnp.float32).at[:, :Dout].set(
        params["wr2"].astype(jnp.float32))
    br2p = jnp.zeros((1, OUTPAD), jnp.float32).at[:, :Dout].set(
        params["br2"].astype(jnp.float32))

    # Block-diagonal mean-pooling matrix: pool[g, g*N + i] = 1/N.
    pool = (jnp.arange(bt)[:, None] == (jnp.arange(bt * N)[None, :] // N))
    pool = pool.astype(jnp.float32) / N

    def full(arr):
        nd = arr.ndim
        return pl.BlockSpec(arr.shape, lambda i, _nd=nd: (0,) * _nd)

    grid = (b_pad // bt,)
    grid_spec = pltpu.PrefetchScalarGridSpec(
        num_scalar_prefetch=0,
        grid=grid,
        in_specs=[
            full(pool),                                     # pooling matrix
            pl.BlockSpec((bt, N, N), lambda i: (i, 0, 0)),  # adj (bf16)
            pl.BlockSpec((bt, N, Din), lambda i: (i, 0, 0)),  # h (bf16)
            full(w1), full(b1),                             # GCN1
            full(w2), full(b2),                             # GCN2
            full(wr1), full(br1),                           # regress1
            full(wr2p), full(br2p),                         # regress2 (padded)
        ],
        out_specs=pl.BlockSpec((bt, OUTPAD), lambda i: (i, 0)),
    )

    out_pad = pl.pallas_call(
        _regressor_kernel,
        out_shape=jax.ShapeDtypeStruct((b_pad, OUTPAD), jnp.float32),
        grid_spec=grid_spec,
        compiler_params=pltpu.CompilerParams(
            dimension_semantics=("parallel",),
            vmem_limit_bytes=32 * 1024 * 1024,
        ),
    )(pool, adj_c, h_c, w1, b1, w2, b2, wr1, br1, wr2p, br2p)

    return out_pad[:B, :Dout]


def _reference_forward(adj, h, params):
    """Pure-JAX f32 reference of the same math (sanity check)."""
    m = jnp.einsum("bij,bjd->bid", adj, h)
    h1 = jax.nn.relu(m @ params["w1"] + params["b1"])
    m2 = jnp.einsum("bij,bjd->bid", adj, h1)
    h2 = jax.nn.relu(m2 @ params["w2"] + params["b2"])
    hg = jnp.mean(h2, axis=1)
    hidden = hg @ params["wr1"] + params["br1"]
    return hidden @ params["wr2"] + params["br2"]


if __name__ == "__main__":
    # Small shapes consistent with the module.
    B, N = 12, 16                # batch of graphs (exercises padding to 16), nodes/graph
    in_dim, hidden_dim1, hidden_dim2, out_size = 32, 32, 16, 1

    key = jax.random.PRNGKey(0)
    k_h, k_adj, k1, k2, k3, k4 = jax.random.split(key, 6)

    # Node features.
    h = jax.random.normal(k_h, (B, N, in_dim), dtype=jnp.float32)

    # Random directed graph + self-loops, row-normalized (mean over in-neighbors).
    # TODO(synk): DGL's update_all with a user-defined mean reduce leaves
    # zero-in-degree nodes with their old features; self-loops sidestep that case.
    raw = (jax.random.uniform(k_adj, (B, N, N)) < 0.3).astype(jnp.float32)
    raw = raw + jnp.eye(N, dtype=jnp.float32)[None]
    raw = jnp.minimum(raw, 1.0)
    adj = raw / jnp.sum(raw, axis=-1, keepdims=True)

    # Deterministic synthetic parameters (nn.Linear weight stored transposed
    # as [in, out] for direct right-matmul; bias as [1, out]).
    def make_linear(k, fan_in, fan_out):
        kw, kb = jax.random.split(k)
        w = jax.random.normal(kw, (fan_in, fan_out), dtype=jnp.float32) * 0.1
        b = jax.random.normal(kb, (1, fan_out), dtype=jnp.float32) * 0.1
        return w, b

    w1, b1 = make_linear(k1, in_dim, hidden_dim1)
    w2, b2 = make_linear(k2, hidden_dim1, hidden_dim1)
    wr1, br1 = make_linear(k3, hidden_dim1, hidden_dim2)
    wr2, br2 = make_linear(k4, hidden_dim2, out_size)

    params = dict(w1=w1, b1=b1, w2=w2, b2=b2,
                  wr1=wr1, br1=br1, wr2=wr2, br2=br2)

    out = jax.block_until_ready(regressor_forward(adj, h, params))
    ref = jax.block_until_ready(_reference_forward(adj, h, params))

    assert out.shape == (B, out_size)
    # bf16 MXU operands -> slightly looser tolerance vs the pure-f32 reference.
    assert jnp.allclose(out, ref, atol=3e-2, rtol=3e-2), (
        f"max abs diff {jnp.max(jnp.abs(out - ref))}")

    print("KERNEL_OK")
</pallas_src>

<mosaic_0001>
module attributes {stable_mosaic.version = 11 : i64} {
  func.func @_regressor_kernel(%arg0: i32, %arg1: memref<8x128xf32, #tpu.memory_space<vmem>>, %arg2: memref<8x16x16xbf16, #tpu.memory_space<vmem>>, %arg3: memref<8x16x32xbf16, #tpu.memory_space<vmem>>, %arg4: memref<32x32xbf16, #tpu.memory_space<vmem>>, %arg5: memref<1x32xf32, #tpu.memory_space<vmem>>, %arg6: memref<32x32xbf16, #tpu.memory_space<vmem>>, %arg7: memref<1x32xf32, #tpu.memory_space<vmem>>, %arg8: memref<32x16xf32, #tpu.memory_space<vmem>>, %arg9: memref<1x16xf32, #tpu.memory_space<vmem>>, %arg10: memref<16x128xf32, #tpu.memory_space<vmem>>, %arg11: memref<1x128xf32, #tpu.memory_space<vmem>>, %arg12: memref<8x128xf32, #tpu.memory_space<vmem>>) attributes {dimension_semantics = [#tpu.dimension_semantics<parallel>], iteration_bounds = array<i64: 2>, scalar_prefetch = 0 : i64, scratch_operands = 0 : i64, tpu.core_type = #tpu.core_type<tc>, window_params = [{pipeline_mode = #tpu.pipeline_mode<synchronous>, transform_indices = @transform_0, window_bounds = array<i64: 8, 128>}, {transform_indices = @transform_1, window_bounds = array<i64: 8, 16, 16>}, {transform_indices = @transform_2, window_bounds = array<i64: 8, 16, 32>}, {pipeline_mode = #tpu.pipeline_mode<synchronous>, transform_indices = @transform_3, window_bounds = array<i64: 32, 32>}, {pipeline_mode = #tpu.pipeline_mode<synchronous>, transform_indices = @transform_4, window_bounds = array<i64: 1, 32>}, {pipeline_mode = #tpu.pipeline_mode<synchronous>, transform_indices = @transform_5, window_bounds = array<i64: 32, 32>}, {pipeline_mode = #tpu.pipeline_mode<synchronous>, transform_indices = @transform_6, window_bounds = array<i64: 1, 32>}, {pipeline_mode = #tpu.pipeline_mode<synchronous>, transform_indices = @transform_7, window_bounds = array<i64: 32, 16>}, {pipeline_mode = #tpu.pipeline_mode<synchronous>, transform_indices = @transform_8, window_bounds = array<i64: 1, 16>}, {pipeline_mode = #tpu.pipeline_mode<synchronous>, transform_indices = @transform_9, window_bounds = array<i64: 16, 128>}, {pipeline_mode = #tpu.pipeline_mode<synchronous>, transform_indices = @transform_10, window_bounds = array<i64: 1, 128>}, {transform_indices = @transform_11, window_bounds = array<i64: 8, 128>}]} {
    %c0 = arith.constant 0 : index
    %c0_0 = arith.constant 0 : index
    %c0_1 = arith.constant 0 : index
    %0 = vector.load %arg2[%c0, %c0_0, %c0_1] : memref<8x16x16xbf16, #tpu.memory_space<vmem>>, vector<8x16x16xbf16>
    %c0_2 = arith.constant 0 : index
    %c0_3 = arith.constant 0 : index
    %c0_4 = arith.constant 0 : index
    %1 = vector.load %arg3[%c0_2, %c0_3, %c0_4] : memref<8x16x32xbf16, #tpu.memory_space<vmem>>, vector<8x16x32xbf16>
    "tpu.trace_start"() <{level = 10 : i32, message = "bij,bjd->bid"}> : () -> ()
    %cst = arith.constant dense<0.000000e+00> : vector<8x16x32xf32>
    %2 = tpu.matmul %0, %1, %cst {dimension_numbers = #tpu.dot_dimension_numbers<[2], [1], [1], [2], [0, 0, 0, 1, 1, 2], [0], [0]>} : vector<8x16x16xbf16>, vector<8x16x32xbf16>, vector<8x16x32xf32> -> vector<8x16x32xf32>
    "tpu.trace_stop"() : () -> ()
    %3 = vector.shape_cast %2 : vector<8x16x32xf32> to vector<128x32xf32>
    %4 = arith.truncf %3 : vector<128x32xf32> to vector<128x32xbf16>
    %c0_5 = arith.constant 0 : index
    %c0_6 = arith.constant 0 : index
    %5 = vector.load %arg4[%c0_5, %c0_6] : memref<32x32xbf16, #tpu.memory_space<vmem>>, vector<32x32xbf16>
    %cst_7 = arith.constant dense<0.000000e+00> : vector<128x32xf32>
    %6 = tpu.matmul %4, %5, %cst_7 {dimension_numbers = #tpu.dot_dimension_numbers<[1], [0], [0], [1], [0, 0, 1, 1], [], []>} : vector<128x32xbf16>, vector<32x32xbf16>, vector<128x32xf32> -> vector<128x32xf32>
    %c0_8 = arith.constant 0 : index
    %c0_9 = arith.constant 0 : index
    %7 = vector.load %arg5[%c0_8, %c0_9] : memref<1x32xf32, #tpu.memory_space<vmem>>, vector<1x32xf32>
    %8 = vector.broadcast %7 : vector<1x32xf32> to vector<128x32xf32>
    %9 = arith.addf %6, %8 : vector<128x32xf32>
    %cst_10 = arith.constant 0.000000e+00 : f32
    %10 = vector.broadcast %cst_10 : f32 to vector<128x32xf32>
    %11 = arith.maximumf %9, %10 : vector<128x32xf32>
    %12 = vector.shape_cast %11 : vector<128x32xf32> to vector<8x16x32xf32>
    %13 = arith.truncf %12 : vector<8x16x32xf32> to vector<8x16x32xbf16>
    "tpu.trace_start"() <{level = 10 : i32, message = "bij,bjd->bid"}> : () -> ()
    %cst_11 = arith.constant dense<0.000000e+00> : vector<8x16x32xf32>
    %14 = tpu.matmul %0, %13, %cst_11 {dimension_numbers = #tpu.dot_dimension_numbers<[2], [1], [1], [2], [0, 0, 0, 1, 1, 2], [0], [0]>} : vector<8x16x16xbf16>, vector<8x16x32xbf16>, vector<8x16x32xf32> -> vector<8x16x32xf32>
    "tpu.trace_stop"() : () -> ()
    %15 = vector.shape_cast %14 : vector<8x16x32xf32> to vector<128x32xf32>
    %16 = arith.truncf %15 : vector<128x32xf32> to vector<128x32xbf16>
    %c0_12 = arith.constant 0 : index
    %c0_13 = arith.constant 0 : index
    %17 = vector.load %arg6[%c0_12, %c0_13] : memref<32x32xbf16, #tpu.memory_space<vmem>>, vector<32x32xbf16>
    %cst_14 = arith.constant dense<0.000000e+00> : vector<128x32xf32>
    %18 = tpu.matmul %16, %17, %cst_14 {dimension_numbers = #tpu.dot_dimension_numbers<[1], [0], [0], [1], [0, 0, 1, 1], [], []>} : vector<128x32xbf16>, vector<32x32xbf16>, vector<128x32xf32> -> vector<128x32xf32>
    %c0_15 = arith.constant 0 : index
    %c0_16 = arith.constant 0 : index
    %19 = vector.load %arg7[%c0_15, %c0_16] : memref<1x32xf32, #tpu.memory_space<vmem>>, vector<1x32xf32>
    %20 = vector.broadcast %19 : vector<1x32xf32> to vector<128x32xf32>
    %21 = arith.addf %18, %20 : vector<128x32xf32>
    %cst_17 = arith.constant 0.000000e+00 : f32
    %22 = vector.broadcast %cst_17 : f32 to vector<128x32xf32>
    %23 = arith.maximumf %21, %22 : vector<128x32xf32>
    %c0_18 = arith.constant 0 : index
    %c0_19 = arith.constant 0 : index
    %24 = vector.load %arg1[%c0_18, %c0_19] : memref<8x128xf32, #tpu.memory_space<vmem>>, vector<8x128xf32>
    %cst_20 = arith.constant dense<0.000000e+00> : vector<8x32xf32>
    %25 = tpu.matmul %24, %23, %cst_20 {dimension_numbers = #tpu.dot_dimension_numbers<[1], [0], [0], [1], [0, 0, 1, 1], [], []>} : vector<8x128xf32>, vector<128x32xf32>, vector<8x32xf32> -> vector<8x32xf32>
    %c0_21 = arith.constant 0 : index
    %c0_22 = arith.constant 0 : index
    %26 = vector.load %arg8[%c0_21, %c0_22] : memref<32x16xf32, #tpu.memory_space<vmem>>, vector<32x16xf32>
    %cst_23 = arith.constant dense<0.000000e+00> : vector<8x16xf32>
    %27 = tpu.matmul %25, %26, %cst_23 {dimension_numbers = #tpu.dot_dimension_numbers<[1], [0], [0], [1], [0, 0, 1, 1], [], []>} : vector<8x32xf32>, vector<32x16xf32>, vector<8x16xf32> -> vector<8x16xf32>
    %c0_24 = arith.constant 0 : index
    %c0_25 = arith.constant 0 : index
    %28 = vector.load %arg9[%c0_24, %c0_25] : memref<1x16xf32, #tpu.memory_space<vmem>>, vector<1x16xf32>
    %29 = vector.broadcast %28 : vector<1x16xf32> to vector<8x16xf32>
    %30 = arith.addf %27, %29 : vector<8x16xf32>
    %c0_26 = arith.constant 0 : index
    %c0_27 = arith.constant 0 : index
    %31 = vector.load %arg10[%c0_26, %c0_27] : memref<16x128xf32, #tpu.memory_space<vmem>>, vector<16x128xf32>
    %cst_28 = arith.constant dense<0.000000e+00> : vector<8x128xf32>
    %32 = tpu.matmul %30, %31, %cst_28 {dimension_numbers = #tpu.dot_dimension_numbers<[1], [0], [0], [1], [0, 0, 1, 1], [], []>} : vector<8x16xf32>, vector<16x128xf32>, vector<8x128xf32> -> vector<8x128xf32>
    %c0_29 = arith.constant 0 : index
    %c0_30 = arith.constant 0 : index
    %33 = vector.load %arg11[%c0_29, %c0_30] : memref<1x128xf32, #tpu.memory_space<vmem>>, vector<1x128xf32>
    %34 = vector.broadcast %33 : vector<1x128xf32> to vector<8x128xf32>
    %35 = arith.addf %32, %34 : vector<8x128xf32>
    %c0_31 = arith.constant 0 : index
    %c0_32 = arith.constant 0 : index
    %36 = vector.load %arg12[%c0_31, %c0_32] : memref<8x128xf32, #tpu.memory_space<vmem>>, vector<8x128xf32>
    tpu.vector_store %arg12[%c0_31, %c0_32], %35 {strides = array<i32>} : memref<8x128xf32, #tpu.memory_space<vmem>>, vector<8x128xf32>,
    return
  }
  func.func @transform_0(%arg0: i32) -> (i32, i32) {
    %c0_i32 = arith.constant 0 : i32
    %c0_i32_0 = arith.constant 0 : i32
    %c0_i32_1 = arith.constant 0 : i32
    return %c0_i32, %c0_i32_0 : i32, i32
  }
  func.func @transform_1(%arg0: i32) -> (i32, i32, i32) {
    %c0_i32 = arith.constant 0 : i32
    %c0_i32_0 = arith.constant 0 : i32
    %c0_i32_1 = arith.constant 0 : i32
    return %arg0, %c0_i32, %c0_i32_0 : i32, i32, i32
  }
  func.func @transform_2(%arg0: i32) -> (i32, i32, i32) {
    %c0_i32 = arith.constant 0 : i32
    %c0_i32_0 = arith.constant 0 : i32
    %c0_i32_1 = arith.constant 0 : i32
    return %arg0, %c0_i32, %c0_i32_0 : i32, i32, i32
  }
  func.func @transform_3(%arg0: i32) -> (i32, i32) {
    %c0_i32 = arith.constant 0 : i32
    %c0_i32_0 = arith.constant 0 : i32
    %c0_i32_1 = arith.constant 0 : i32
    return %c0_i32, %c0_i32_0 : i32, i32
  }
  func.func @transform_4(%arg0: i32) -> (i32, i32) {
    %c0_i32 = arith.constant 0 : i32
    %c0_i32_0 = arith.constant 0 : i32
    %c0_i32_1 = arith.constant 0 : i32
    return %c0_i32, %c0_i32_0 : i32, i32
  }
  func.func @transform_5(%arg0: i32) -> (i32, i32) {
    %c0_i32 = arith.constant 0 : i32
    %c0_i32_0 = arith.constant 0 : i32
    %c0_i32_1 = arith.constant 0 : i32
    return %c0_i32, %c0_i32_0 : i32, i32
  }
  func.func @transform_6(%arg0: i32) -> (i32, i32) {
    %c0_i32 = arith.constant 0 : i32
    %c0_i32_0 = arith.constant 0 : i32
    %c0_i32_1 = arith.constant 0 : i32
    return %c0_i32, %c0_i32_0 : i32, i32
  }
  func.func @transform_7(%arg0: i32) -> (i32, i32) {
    %c0_i32 = arith.constant 0 : i32
    %c0_i32_0 = arith.constant 0 : i32
    %c0_i32_1 = arith.constant 0 : i32
    return %c0_i32, %c0_i32_0 : i32, i32
  }
  func.func @transform_8(%arg0: i32) -> (i32, i32) {
    %c0_i32 = arith.constant 0 : i32
    %c0_i32_0 = arith.constant 0 : i32
    %c0_i32_1 = arith.constant 0 : i32
    return %c0_i32, %c0_i32_0 : i32, i32
  }
  func.func @transform_9(%arg0: i32) -> (i32, i32) {
    %c0_i32 = arith.constant 0 : i32
    %c0_i32_0 = arith.constant 0 : i32
    %c0_i32_1 = arith.constant 0 : i32
    return %c0_i32, %c0_i32_0 : i32, i32
  }
  func.func @transform_10(%arg0: i32) -> (i32, i32) {
    %c0_i32 = arith.constant 0 : i32
    %c0_i32_0 = arith.constant 0 : i32
    %c0_i32_1 = arith.constant 0 : i32
    return %c0_i32, %c0_i32_0 : i32, i32
  }
  func.func @transform_11(%arg0: i32) -> (i32, i32) {
    %c0_i32 = arith.constant 0 : i32
    %c0_i32_0 = arith.constant 0 : i32
    return %arg0, %c0_i32 : i32, i32
  }
}

</mosaic_0001>

<bundles_post_ra>
// kernel: tpu_custom_call.1
= control target key start
LH: loop header
LB: loop body
LE: loop exit
PB: predicated region body
PF: predicated region fallthrough
CT: control target
= control target key end

     0   :  { %s3118_s0 = inlined_call_operand.hbm [shape: f32[8,128], index: 0, kind: input, shape index: {}]   ;;  %s3119_s1 = inlined_call_operand.hbm [shape: bf16[16,16,16], index: 1, kind: input, shape index: {}]   ;;  %s3120_s2 = inlined_call_operand.hbm [shape: bf16[16,16,32], index: 2, kind: input, shape index: {}]   ;;  %s3121_s3 = inlined_call_operand.vmem [shape: bf16[32,32], index: 3, kind: input, shape index: {}]   ;;  %s3122_s4 = inlined_call_operand.vmem [shape: f32[1,32], index: 4, kind: input, shape index: {}]   ;;  %s3123_s5 = inlined_call_operand.vmem [shape: bf16[32,32], index: 5, kind: input, shape index: {}]   ;;  %s3124_s6 = inlined_call_operand.vmem [shape: f32[1,32], index: 6, kind: input, shape index: {}]   ;;  %s3125_s7 = inlined_call_operand.vmem [shape: f32[32,16], index: 7, kind: input, shape index: {}]   ;;  %s3126_s8 = inlined_call_operand.vmem [shape: f32[1,16], index: 8, kind: input, shape index: {}]   ;;  %s3127_s9 = inlined_call_operand.vmem [shape: f32[16,128], index: 9, kind: input, shape index: {}]   ;;  %s3128_s10 = inlined_call_operand.vmem [shape: f32[1,128], index: 10, kind: input, shape index: {}]   ;;  %s3129_s11 = inlined_call_operand.hbm [shape: f32[16,128], index: 11, kind: output, shape index: {}]  }
   0x1   :  { %3139 = sst [smem:[#allocation15_spill]] %s3119_s1 }
   0x2   :  { %16 = vsyncpa [#allocation3], 0 }
   0x3   :  { %17 = vsyncpa [#allocation6], 0 }
   0x4   :  { %19 = vsyncpa [#allocation6 + $0x1], 0 }
   0x5   :  { %20 = vsyncpa [#allocation4], 0 }
   0x6   :  { %22 = vsyncpa [#allocation4 + $0x1], 0  ;;  %s2658_s17 = smov 0   ;;  %s2660_s18 = smov 0  }
   0x7   :  { %s2662_s19 = smov 0   ;;  %s2664_s20 = smov 0  }
   0x8 LB: > { %3140 = sst [smem:[#allocation12_spill]] %s2583_s19  ;;  %s2679_s21 = sadd.s32 1, %s2587_s20   ;;  %s2587_s20 = sphi %s2664_s20, %s3161_s20   ;;  %s2583_s19 = sphi %s2662_s19, %s3163_s19   ;;  %s2579_s18 = sphi %s2660_s18, %s3165_s18   ;;  %s2575_s17 = sphi %s2658_s17, %s3164_s17  }
   0x9   : > { %3141 = sst [smem:[#allocation13_spill]] %s2679_s21  ;;  %s56_s22 = sadd.s32 1, %s2583_s19 }
   0xa   : > { %s53_s23 = ssub.s32 %s2587_s20, %s2679_s21  ;;  %p63_p0 = scmp.ne.s32.totalorder %s2583_s19, %s2579_s18 }
   0xb   : > { %p54_p1 = scmp.eq.s32.totalorder %s53_s23, 0  ;;  %p64_p2 = scmp.eq.s32.totalorder %s2587_s20, 0 }
   0xc   : > { %p2368_p4 = scmp.lt.s32.totalorder %s2587_s20, 2  ;;  %s348_s25 = sand.u32 1, %s2587_s20  }
   0xd   : > { %s2690_s24 = scalar_select %p54_p1, %s2583_s19, %s56_s22  }
   0xe   : > { %p65_p5 = por %p64_p2, %p63_p0  ;;  %s350_s26 = sand.u32 1, %s2583_s19  }
   0xf   : > { %3142 = sst [smem:[#allocation14_spill]] %s2690_s24  ;;  %s2697_s27 = sshll.u32 %s350_s26, 6 }
  0x10   : > { %s2040_s28 = sshll.u32 %s2587_s20, 10  ;;  %s3143_s1 = sld [smem:[#allocation15_spill]] }
  0x11   : > { %s352_s13 = scalar_lea.vmem [#allocation5], %s2697_s27  ;;  %p2708_p6 = pnand %p2368_p4, %p65_p5 }
  0x12   : > { %s360_s14 = sshll.u32 %s352_s13, 4  ;;  %s2714_s16 = scalar_lea.sflag [#allocation6], %s348_s25  ;;  %s2712_s14 = int_to_ptr.vmem [resolvable:$true] %s360_s14 }
  0x13   : > { %p2431_p8 = pneg %p2708_p6 }
  0x16   : > { %s2705_s12 = scalar_lea.hbm %s3143_s1, %s2040_s28  ;;  %s2434_s29 = scalar_lea.hbm %s3143_s1, 2048 }
  0x17   : > { %s2429_s22 = scalar_lea.hbm %s2705_s12, 1024  ;;  %p2435_p11 = scmp.lt.u32.totalorder %s2705_s12, %s3143_s1 }
  0x18   : > { %p2430_p7 = scmp.ne.s32.totalorder %s2705_s12, %s2429_s22  ;;  %p2436_p12 = scmp.lt.u32.totalorder %s2434_s29, %s2429_s22 }
  0x19   : > { %p2438_p1 = scmp.lt.u32.totalorder %s2429_s22, %s2705_s12 }
  0x1a   : > { %p2432_p9 = pnand %p2431_p8, %p2430_p7  ;;  %p2437_p13 = por %p2436_p12, %p2435_p11 }
  0x1c   : > { %p2433_p10 = pneg %p2432_p9  ;;  %p2439_p2 = por %p2438_p1, %p2437_p13 }
  0x1e   : > { %p2440_p4 = pnand %p2439_p2, %p2433_p10 }
  0x20   : > { %2443 = shalt.err (!%p2440_p4)
}
  0x21   : > { %s2444_s25 = scalar_lea.vmem %s2712_s14, 1024  ;;  %s2589_s23 = smov [#allocation5]  }
  0x22   : > { %p2445_p5 = scmp.ne.s32.totalorder %s2712_s14, %s2444_s25  ;;  %s2449_s26 = sshll.u32 %s2589_s23, 4  ;;  %s2450_s26 = int_to_ptr.vmem [resolvable:$false] %s2449_s26 }
  0x23   : > { %s2451_s30 = scalar_lea.vmem %s2450_s26, 2048  ;;  %p2452_p3 = scmp.lt.s32.totalorder %s2712_s14, %s2450_s26 }
  0x24   : > { %p2447_p7 = pnand %p2445_p5, %p2431_p8  ;;  %p2453_p11 = scmp.lt.s32.totalorder %s2451_s30, %s2444_s25 }
  0x26   : > { %p2448_p9 = pneg %p2447_p7  ;;  %p2454_p12 = por %p2453_p11, %p2452_p3 }
  0x28   : > { %p2455_p13 = pnand %p2454_p12, %p2448_p9 }
  0x2a   : > { %2458 = shalt.err (!%p2455_p13)
}
  0x2b   : > { %s3130_s22 = smov 64   ;;  %s3131_s29 = smov 4  }
  0x2c   : > { %2359 = dma.hbm_to_vmem [thread:$0]  (!%p2708_p6), %s2705_s12, 1024, %s2712_s14, %s2714_s16, %s3130_s22, %s3130_s22, %s3131_s29  }
  0x2d   : > { %s374_s13 = scalar_lea.vmem [#allocation7], %s2697_s27  ;;  %s2747_s23 = sadd.s32 4294967295, %s2587_s20  }
  0x2e   : > { %s382_s25 = sshll.u32 %s374_s13, 4  ;;  %s1960_s26 = sadd.s32 4294967294, %s2587_s20   ;;  %s2780_s25 = int_to_ptr.vmem [resolvable:$true] %s382_s25 }
  0x2f   : > { %p69_p3 = scmp.ne.s32.totalorder %s2579_s18, %s2575_s17  ;;  %p3135_p10 = scmp.eq.s32.totalorder %s2747_s23, 0 }
  0x30   : > { %p287_p1 = scmp.eq.s32.totalorder %s2747_s23, 1  ;;  %p293_p2 = scmp.eq.s32.totalorder %s1960_s26, 1 }
  0x31   : > { %p2756_p4 = por %p3135_p10, %p69_p3  ;;  %p1961_p5 = scmp.ge.s32.totalorder %s2587_s20, 1 }
  0x32   : > { %p2764_p7 = por %p287_p1, %p63_p0  ;;  %p2768_p9 = por %p293_p2, %p69_p3 }
  0x33   : > { %s3145_s30 = scalar_select %p2756_p4, 1, 0 }
  0x34   : > { %s3146_s27 = scalar_select %p2764_p7, 1, 0 }
  0x35   : > { %s3147_s12 = scalar_select %p2768_p9, 1, 0 }
  0x36   : > { %p300_p11 = scmp.lt.s32.totalorder %s2587_s20, 3  ;;  %s2778_s26 = scalar_lea.hbm %s3120_s2, %s2040_s28 }
  0x37   : > { %s2592_s29 = smov [#allocation2]   ;;  %s2459_s24 = scalar_lea.hbm %s2778_s26, 1024 }
  0x38   : > { %p2782_p0 = pnand %p1961_p5, %p300_p11  ;;  %s2786_s1 = sshll.u32 %s2592_s29, 4  ;;  %s314_s1 = int_to_ptr.vmem [resolvable:$true] %s2786_s1 }
  0x39   : > { %p2460_p13 = scmp.ne.s32.totalorder %s2778_s26, %s2459_s24  ;;  %s2464_s13 = scalar_lea.hbm %s3120_s2, 2048 }
  0x3a   : > { %s3148_s22 = scalar_select %p2782_p0, 1, 0 }
  0x3b   : > { %p2462_p3 = pnand %p2460_p13, %p2431_p8  ;;  %p2465_p2 = scmp.lt.u32.totalorder %s2778_s26, %s3120_s2 }
  0x3c   : > { %p2466_p5 = scmp.lt.u32.totalorder %s2464_s13, %s2459_s24  ;;  %p2468_p10 = scmp.lt.u32.totalorder %s2459_s24, %s2778_s26 }
  0x3d   : > { %p2463_p1 = pneg %p2462_p3 }
  0x3e   : > { %p2467_p11 = por %p2466_p5, %p2465_p2 }
  0x40   : > { %p2469_p9 = por %p2468_p10, %p2467_p11 }
  0x42   : > { %p2470_p7 = pnand %p2469_p9, %p2463_p1 }
  0x44   : > { %2473 = shalt.err (!%p2470_p7)
}
  0x45   : > { %s2474_s29 = scalar_lea.vmem %s2780_s25, 1024  ;;  %s2593_s28 = smov [#allocation7]  }
  0x46   : > { %p2475_p13 = scmp.ne.s32.totalorder %s2780_s25, %s2474_s29  ;;  %s2479_s14 = sshll.u32 %s2593_s28, 4  ;;  %s2480_s14 = int_to_ptr.vmem [resolvable:$false] %s2479_s14 }
  0x47   : > { %s2481_s19 = scalar_lea.vmem %s2480_s14, 2048  ;;  %p2482_p4 = scmp.lt.s32.totalorder %s2780_s25, %s2480_s14 }
  0x48   : > { %p2477_p3 = pnand %p2475_p13, %p2431_p8  ;;  %p2483_p2 = scmp.lt.s32.totalorder %s2481_s19, %s2474_s29 }
  0x4a   : > { %p2478_p12 = pneg %p2477_p3  ;;  %p2484_p5 = por %p2483_p2, %p2482_p4 }
  0x4c   : > { %p2485_p10 = pnand %p2484_p5, %p2478_p12 }
  0x4e   : > { %2488 = shalt.err (!%p2485_p10)
}
  0x4f   : > { %s3149_s21 = smov 4   ;;  %s3150_s24 = smov 64  }
  0x50   : > { %2362 = dma.hbm_to_vmem [thread:$0]  (!%p2708_p6), %s2778_s26, 1024, %s2780_s25, %s2714_s16, %s3150_s24, %s3150_s24, %s3149_s21  }
  0x51   : > { %p3151_p8 = scmp.eq.s32.totalorder %s2747_s23, 0  ;;  %p3152_p7 = pneg %p2782_p0 }
  0x52   : > { %s2489_s28 = scalar_lea.hbm %s3118_s0, 128 }
  0x53   : > { %p2823_p9 = pnand %p3152_p7, %p3151_p8  ;;  %p2490_p4 = scmp.ne.s32.totalorder %s3118_s0, %s2489_s28 }
  0x54   : > { %p2496_p11 = scmp.lt.u32.totalorder %s2489_s28, %s3118_s0 }
  0x55   : > { %p2491_p12 = pneg %p2823_p9 }
  0x57   : > { %p2492_p6 = pnand %p2491_p12, %p2490_p4 }
  0x59   : > { %p2493_p1 = pneg %p2492_p6 }
  0x5b   : > { %p2498_p13 = pnand %p2496_p11, %p2493_p1 }
  0x5d   : > { %2501 = shalt.err (!%p2498_p13)
}
  0x5e   : > { %s2502_s26 = scalar_lea.vmem %s314_s1, 128  ;;  %p2510_p10 = scmp.lt.s32.totalorder %s314_s1, %s314_s1 }
  0x5f   : > { %p2503_p3 = scmp.ne.s32.totalorder %s314_s1, %s2502_s26  ;;  %p2511_p8 = scmp.lt.s32.totalorder %s2502_s26, %s2502_s26 }
  0x61   : > { %p2505_p2 = pnand %p2503_p3, %p2491_p12  ;;  %p2512_p7 = por %p2511_p8, %p2510_p10 }
  0x63   : > { %p2506_p5 = pneg %p2505_p2 }
  0x65   : > { %p2513_p0 = pnand %p2512_p7, %p2506_p5 }
  0x67   : > { %2516 = shalt.err (!%p2513_p0)
}
  0x68   : > { %2355 = dma.hbm_to_vmem [thread:$0]  (!%p2823_p9), %s3118_s0, 128, %s314_s1, [#allocation3]  }
  0x69   : > { %p3154_p4 = scmp.ne.s32.totalorder %s3148_s22, 0 }
  0x6a   : > { %p3155_p6 = scmp.eq.s32.totalorder (!%p3154_p4), %s2747_s23, 0 }
  0x6b   : > { %394 = sbr.rel (%p3154_p4) target bundleno = 1705 (0x6a9), region = 64 }
  0x72   : > { %2562 = dma.done.wait (%p3155_p6), [#allocation3], 128   ;;  %p3156_p12 = pmov %p3155_p6 }
  0x73   : > { %s400_s29 = sand.u32 1, %s2747_s23   ;;  %s2851_s15 = sand.u32 1, %s2579_s18  }
  0x74   : > { %2564 = vsyncadd (%p3156_p12), [#allocation3], 4294967168  ;;  %s1974_s13 = sshll.u32 %s2851_s15, 6  ;;  %s401_s28 = scalar_lea.sflag [#allocation6], %s400_s29 }
  0x75   : > { %s2854_s14 = scalar_lea.vmem [#allocation5], %s1974_s13  ;;  %p3157_p0 = scmp.ne.s32.totalorder %s3145_s30, 0 }
  0x77   : > { %2566 = dma.done.wait (%p3157_p0), %s401_s28, 2048  }
  0x78   : > { %2568 = vsyncadd (%p3157_p0), %s401_s28, 4294965248  ;;  %v2594_v0 = vmov 0.0   ;;  %vm2595_vm0 = vmmov 0   ;;  %s2866_s1 = scalar_lea.vmem [#allocation7], %s1974_s13  ;;  %v2871_v3 = vld [vmem:[%s2854_s14] sm:$0xff]   ;;  %vm503_vm1 = vcmask 130048  }
  0x79   : > { %2120 = vmatprep.subr.bf16.mxu0 %v2594_v0  ;;  %2126 = vmatprep.subr.bf16.mxu1 %v2594_v0  ;;  %v2409_v1 = vld [vmem:[%s2866_s1] sm:$0xff]   ;;  %v2410_v2 = vld [vmem:[%s2866_s1 + $0x8] sm:$0xff]   ;;  %v2413_v5 = vld [vmem:[%s2866_s1 + $0x10] sm:$0xff]   ;;  %vm964_vm2 = vcmask 261120   ;;  %s1976_s22 = sshll.u32 %s2851_s15, 3  ;;  %s2036_s16 = sshll.u32 %s2747_s23, 7 }
  0x7a   : > { %2122 = vmatprep.mubr.msk.bf16.mxu0 %vm2595_vm0, %v2594_v0  ;;  %2128 = vmatprep.mubr.msk.bf16.mxu1 %vm2595_vm0, %v2594_v0  ;;  %v2874_v4 = vld [vmem:[%s2854_s14 + $0x8] sm:$0xff]   ;;  %v2414_v6 = vld [vmem:[%s2866_s1 + $0x18] sm:$0xff]   ;;  %v2889_v7 = vld [vmem:[%s2854_s14 + $0x10] sm:$0xff]   ;;  %s456_s25 = scalar_lea.vmem [#allocation8], %s1976_s22  ;;  %s3074_s29 = scalar_lea.hbm %s3129_s11, %s2036_s16 }
  0x7b   : > { %2121 = vmatpush3.bf16.msra.mxu0 %v2409_v1  ;;  %2127 = vmatpush3.bf16.msra.mxu1 %v2410_v2  ;;  %v2893_v8 = vld [vmem:[%s2854_s14 + $0x18] sm:$0xff]   ;;  %v2417_v9 = vld [vmem:[%s2866_s1 + $0x20] sm:$0xff]   ;;  %v2418_v10 = vld [vmem:[%s2866_s1 + $0x28] sm:$0xff]   ;;  %s1858_s26 = sshll.u32 %s456_s25, 4  ;;  %s1845_s13 = scalar_lea.sflag [#allocation4], %s2851_s15  ;;  %s3076_s26 = int_to_ptr.vmem [resolvable:$true] %s1858_s26 }
  0x7c   : > { %2132 = vmatprep.subr.bf16.mxu0 %v2594_v0  ;;  %2138 = vmatprep.subr.bf16.mxu1 %v2594_v0  ;;  %v2905_v11 = vld [vmem:[%s2854_s14 + $0x20] sm:$0xff]   ;;  %v2910_v12 = vld [vmem:[%s2854_s14 + $0x28] sm:$0xff]   ;;  %v2421_v13 = vld [vmem:[%s2866_s1 + $0x30] sm:$0xff]   ;;  %s2517_s28 = scalar_lea.vmem %s3076_s26, 128  ;;  %p3158_p1 = scmp.ne.s32.totalorder %s3146_s27, 0 }
  0x7d   : > { %v2422_v14 = vld [vmem:[%s2866_s1 + $0x38] sm:$0xff]   ;;  %v2928_v16 = vld [vmem:[%s2854_s14 + $0x30] sm:$0xff]   ;;  %v2426_v18 = vld [vmem:[%s3121_s3 + $0x8] sm:$0xff]   ;;  %p2518_p9 = scmp.ne.s32.totalorder %s3076_s26, %s2517_s28  ;;  %s2597_s23 = smov [#allocation8]  }
  0x7e   : > { %2123 = vmatmul.mubr.msk.bf16.vlgmr.msra.gmra.mrb[0].mxu0 %vm503_vm1, %v2871_v3  ;;  %2129 = vmatmul.mubr.msk.bf16.vlgmr.msra.gmra.mrb[0].mxu1 %vm503_vm1, %v2874_v4  ;;  %v2425_v15 = vld [vmem:[%s3121_s3] sm:$0xff]  }
  0x7f   : > { %2133 = vmatpush3.bf16.msra.mxu0 %v2413_v5  ;;  %2139 = vmatpush3.bf16.msra.mxu1 %v2414_v6  ;;  %v2932_v17 = vld [vmem:[%s2854_s14 + $0x38] sm:$0xff]   ;;  %p2519_p11 = pnand %p2518_p9, %p3158_p1  ;;  %s2521_s14 = sshll.u32 %s2597_s23, 4  ;;  %s2522_s14 = int_to_ptr.vmem [resolvable:$false] %s2521_s14 }
  0x80   : > { %2134 = vmatprep.mubr.msk.bf16.mxu0 %vm2595_vm0, %v2594_v0  ;;  %2140 = vmatprep.mubr.msk.bf16.mxu1 %vm2595_vm0, %v2594_v0  ;;  %v2957_v59 = vld [vmem:[%s3122_s4] ss:$0 sm:$0xff]  ;;  %s2523_s1 = scalar_lea.vmem %s2522_s14, 256  ;;  %p2524_p3 = scmp.lt.s32.totalorder %s3076_s26, %s2522_s14 }
  0x81   : > { %2144 = vmatprep.subr.bf16.mxu0 %v2594_v0  ;;  %2150 = vmatprep.subr.bf16.mxu1 %v2594_v0  ;;  %p2520_p13 = pneg %p2519_p11  ;;  %p2525_p2 = scmp.lt.s32.totalorder %s2523_s1, %s2517_s28 }
  0x83   : > { %p2526_p5 = por %p2525_p2, %p2524_p3 }
  0x85   : > { %p2527_p10 = pnand %p2526_p5, %p2520_p13 }
  0x86   : > { %2135 = vmatmul.mubr.msk.bf16.vlgmr.msra.gmra.mrb[4].mxu0 %vm503_vm1, %v2889_v7  ;;  %2141 = vmatmul.mubr.msk.bf16.vlgmr.msra.gmra.mrb[4].mxu1 %vm503_vm1, %v2893_v8 }
  0x87   : > { %2145 = vmatpush3.bf16.msra.mxu0 %v2417_v9  ;;  %2151 = vmatpush3.bf16.msra.mxu1 %v2418_v10 }
  0x88   : > { %2146 = vmatprep.mubr.msk.bf16.mxu0 %vm2595_vm0, %v2594_v0  ;;  %2152 = vmatprep.mubr.msk.bf16.mxu1 %vm2595_vm0, %v2594_v0 }
  0x89   : > { %2156 = vmatprep.subr.bf16.mxu0 %v2594_v0  ;;  %2162 = vmatprep.subr.bf16.mxu1 %v2594_v0 }
  0x8e   : > { %2147 = vmatmul.mubr.msk.bf16.vlgmr.msra.gmra.mrb[8].mxu0 %vm503_vm1, %v2905_v11  ;;  %2153 = vmatmul.mubr.msk.bf16.vlgmr.msra.gmra.mrb[8].mxu1 %vm503_vm1, %v2910_v12 }
  0x8f   : > { %2157 = vmatpush3.bf16.msra.mxu0 %v2421_v13  ;;  %2163 = vmatpush3.bf16.msra.mxu1 %v2422_v14 }
  0x90   : > { %2158 = vmatprep.mubr.msk.bf16.mxu0 %vm2595_vm0, %v2594_v0  ;;  %2164 = vmatprep.mubr.msk.bf16.mxu1 %vm2595_vm0, %v2594_v0 }
  0x91   : > { %2168 = vmatprep.subr.bf16.mxu0 %v2425_v15  ;;  %2188 = vmatprep.subr.bf16.mxu1 %v2594_v0 }
  0x96   : > { %2159 = vmatmul.mubr.msk.bf16.vlgmr.msra.gmra.mrb[12].mxu0 %vm503_vm1, %v2928_v16  ;;  %2165 = vmatmul.mubr.msk.bf16.vlgmr.msra.gmra.mrb[12].mxu1 %vm503_vm1, %v2932_v17 }
  0x97   : > { %2169 = vmatpush3.bf16.msra.mxu0 %v2425_v15  ;;  %2190 = vmatprep.mubr.msk.bf16.mxu1 %vm2595_vm0, %v2594_v0 }
  0x98   : > { %2170 = vmatprep.subr.bf16.mxu0 %v2426_v18 }
  0x9b   : > { %2171 = vmatpush3.bf16.msra.mxu0 %v2426_v18 }
  0x9c   : > { %2212 = vmatprep.subr.bf16.mxu0 %v2594_v0 }
 0x151   : > { %v541_v19 = vpop.f32.mrb[0].mxu0  ;;  %v596_v20 = vpop.f32.mrb[0].mxu1 }
 0x152   : > { %v2124_v21 = vpop.f32.mrb[1].mxu0  ;;  %v2130_v22 = vpop.f32.mrb[1].mxu1 }
 0x153   : > { %v544_v23 = vpop.f32.mrb[2].mxu0  ;;  %v599_v25 = vpop.f32.mrb[2].mxu1 }
 0x154   : > { %v933_v24 = vpack.c.bf16 %v544_v23, %v541_v19  ;;  %v2125_v26 = vpop.f32.mrb[3].mxu0  ;;  %v934_v27 = vpack.c.bf16 %v599_v25, %v596_v20  ;;  %v2131_v28 = vpop.f32.mrb[3].mxu1 }
 0x156   : > { %2172 = vmatprep.mubr.msk.bf16.mxu0 %vm964_vm2, %v933_v24 }
 0x157   : > { %2173 = vmatmul.mubr.msk.bf16.vlgmr.msra.gmra.mrb[16].mxu0 %vm964_vm2, %v934_v27 }
 0x159   : > { %v651_v29 = vpop.f32.mrb[4].mxu0  ;;  %v706_v30 = vpop.f32.mrb[4].mxu1 }
 0x15a   : > { %v2136_v31 = vpop.f32.mrb[5].mxu0  ;;  %v2142_v32 = vpop.f32.mrb[5].mxu1 }
 0x15b   : > { %v654_v33 = vpop.f32.mrb[6].mxu0  ;;  %v709_v35 = vpop.f32.mrb[6].mxu1 }
 0x15c   : > { %v935_v34 = vpack.c.bf16 %v654_v33, %v651_v29  ;;  %v2137_v36 = vpop.f32.mrb[7].mxu0  ;;  %v936_v37 = vpack.c.bf16 %v709_v35, %v706_v30  ;;  %v2143_v38 = vpop.f32.mrb[7].mxu1 }
 0x15e   : > { %2176 = vmatprep.mubr.msk.bf16.mxu0 %vm964_vm2, %v935_v34 }
 0x15f   : > { %2177 = vmatmul.mubr.msk.bf16.gmra.mrb[20].mxu0 %vm964_vm2, %v936_v37 }
 0x161   : > { %v761_v39 = vpop.f32.mrb[8].mxu0  ;;  %v816_v40 = vpop.f32.mrb[8].mxu1 }
 0x162   : > { %v2148_v41 = vpop.f32.mrb[9].mxu0  ;;  %v2154_v42 = vpop.f32.mrb[9].mxu1 }
 0x163   : > { %v764_v43 = vpop.f32.mrb[10].mxu0  ;;  %v819_v45 = vpop.f32.mrb[10].mxu1 }
 0x164   : > { %v937_v44 = vpack.c.bf16 %v764_v43, %v761_v39  ;;  %v2149_v46 = vpop.f32.mrb[11].mxu0  ;;  %v938_v47 = vpack.c.bf16 %v819_v45, %v816_v40  ;;  %v2155_v48 = vpop.f32.mrb[11].mxu1 }
 0x166   : > { %2180 = vmatprep.mubr.msk.bf16.mxu0 %vm964_vm2, %v937_v44 }
 0x167   : > { %2181 = vmatmul.mubr.msk.bf16.gmra.mrb[24].mxu0 %vm964_vm2, %v938_v47 }
 0x169   : > { %v871_v49 = vpop.f32.mrb[12].mxu0  ;;  %v926_v51 = vpop.f32.mrb[12].mxu1 }
 0x16a   : > { %v2160_v50 = vpop.f32.mrb[13].mxu0  ;;  %v2166_v53 = vpop.f32.mrb[13].mxu1 }
 0x16b   : > { %v874_v52 = vpop.f32.mrb[14].mxu0  ;;  %v929_v55 = vpop.f32.mrb[14].mxu1 }
 0x16c   : > { %v939_v54 = vpack.c.bf16 %v874_v52, %v871_v49  ;;  %v2161_v56 = vpop.f32.mrb[15].mxu0  ;;  %v940_v57 = vpack.c.bf16 %v929_v55, %v926_v51  ;;  %v2167_v58 = vpop.f32.mrb[15].mxu1 }
 0x16e   : > { %2184 = vmatprep.mubr.msk.bf16.mxu0 %vm964_vm2, %v939_v54 }
 0x16f   : > { %2185 = vmatmul.mubr.msk.bf16.gmra.mrb[28].mxu0 %vm964_vm2, %v940_v57 }
 0x170   : > { %2214 = vmatprep.mubr.msk.bf16.mxu0 %vm2595_vm0, %v2594_v0 }
 0x22a   : > { %v2174_v60 = vpop.f32.mrb[16].mxu0 }
 0x22b   : > { %v1032_v61 = vadd.f32 %v2174_v60, %v2957_v59  ;;  %v1023_v62 = vpop.f32.mrb[17].mxu0 }
 0x22c   : > { %v1024_v63 = vadd.f32 %v2957_v59, %v1023_v62  ;;  %v2175_v1 = vpop.f32.mrb[18].mxu0 }
 0x22d   : > { %v1035_v2 = vadd.f32 %v2175_v1, %v2957_v59  ;;  %v1026_v5 = vpop.f32.mrb[19].mxu0  ;;  %v1088_v9 = vmax.f32 %v1032_v61, 0.0 }
 0x22e   : > { %v1027_v6 = vadd.f32 %v2957_v59, %v1026_v5  ;;  %v1086_v13 = vmax.f32 %v1024_v63, 0.0 }
 0x22f   : > { %v1089_v10 = vmax.f32 %v1035_v2, 0.0 }
 0x230   : > { %v1087_v14 = vmax.f32 %v1027_v6, 0.0 }
 0x231   : > { %v1103_v15 = vpack.c.bf16 %v1089_v10, %v1088_v9 }
 0x232   : > { %v1102_v18 = vpack.c.bf16 %v1087_v14, %v1086_v13  ;;  %v2178_v19 = vpop.f32.mrb[20].mxu0 }
 0x233   : > { %v1048_v20 = vadd.f32 %v2178_v19, %v2957_v59  ;;  %v1039_v21 = vpop.f32.mrb[21].mxu0 }
 0x234   : > { %v1040_v22 = vadd.f32 %v2957_v59, %v1039_v21  ;;  %v2179_v23 = vpop.f32.mrb[22].mxu0  ;;  %2189 = vmatpush3.bf16.msra.mxu1 %v1102_v18 }
 0x235   : > { %v1092_v24 = vmax.f32 %v1048_v20, 0.0  ;;  %v1051_v25 = vadd.f32 %v2179_v23, %v2957_v59  ;;  %v1042_v26 = vpop.f32.mrb[23].mxu0  ;;  %2194 = vmatprep.subr.bf16.mxu1 %v2594_v0 }
 0x236   : > { %v1090_v27 = vmax.f32 %v1040_v22, 0.0  ;;  %v1043_v28 = vadd.f32 %v2957_v59, %v1042_v26 }
 0x237   : > { %v1093_v29 = vmax.f32 %v1051_v25, 0.0  ;;  %2191 = vmatmul.mubr.msk.bf16.vlgmr.msra.gmra.mrb[16].mxu1 %vm503_vm1, %v2871_v3 }
 0x238   : > { %v1091_v30 = vmax.f32 %v1043_v28, 0.0  ;;  %2195 = vmatpush3.bf16.msra.mxu1 %v1103_v15  ;;  %2196 = vmatprep.mubr.msk.bf16.mxu1 %vm2595_vm0, %v2594_v0 }
 0x239   : > { %v1105_v31 = vpack.c.bf16 %v1093_v29, %v1092_v24  ;;  %2200 = vmatprep.subr.bf16.mxu1 %v2594_v0 }
 0x23a   : > { %v1104_v32 = vpack.c.bf16 %v1091_v30, %v1090_v27  ;;  %v2182_v33 = vpop.f32.mrb[24].mxu0 }
 0x23b   : > { %v1064_v34 = vadd.f32 %v2182_v33, %v2957_v59  ;;  %v1055_v35 = vpop.f32.mrb[25].mxu0 }
 0x23c   : > { %v1056_v36 = vadd.f32 %v2957_v59, %v1055_v35  ;;  %v2183_v37 = vpop.f32.mrb[26].mxu0 }
 0x23d   : > { %v1096_v38 = vmax.f32 %v1064_v34, 0.0  ;;  %v1067_v39 = vadd.f32 %v2183_v37, %v2957_v59  ;;  %v1058_v3 = vpop.f32.mrb[27].mxu0 }
 0x23e   : > { %v1094_v40 = vmax.f32 %v1056_v36, 0.0  ;;  %v1059_v41 = vadd.f32 %v2957_v59, %v1058_v3  ;;  %v2596_v3 = vmov 0.0|0.0  }
 0x23f   : > { %v1097_v42 = vmax.f32 %v1067_v39, 0.0  ;;  %2197 = vmatmul.mubr.msk.bf16.vlgmr.msra.gmra.mrb[20].mxu1 %vm503_vm1, %v2874_v4 }
 0x240   : > { %v1095_v43 = vmax.f32 %v1059_v41, 0.0  ;;  %2201 = vmatpush3.bf16.msra.mxu1 %v1104_v32  ;;  %2202 = vmatprep.mubr.msk.bf16.mxu1 %vm2595_vm0, %v2594_v0  ;;  %v1678_v41 = vld [vmem:[%s3125_s7 + $0x8] sm:$0xff] }
 0x241   : > { %v1107_v44 = vpack.c.bf16 %v1097_v42, %v1096_v38  ;;  %2206 = vmatprep.subr.bf16.mxu1 %v2594_v0  ;;  %v1679_v42 = vld [vmem:[%s3125_s7 + $0x10] sm:$0xff] }
 0x242   : > { %v1106_v45 = vpack.c.bf16 %v1095_v43, %v1094_v40  ;;  %v2186_v46 = vpop.f32.mrb[28].mxu0  ;;  %v1677_v40 = vld [vmem:[%s3125_s7] sm:$0xff] }
 0x243   : > { %v1080_v47 = vadd.f32 %v2186_v46, %v2957_v59  ;;  %v1071_v48 = vpop.f32.mrb[29].mxu0  ;;  %v2334_v43 = vpack.c.bf16 %v1678_v41, %v1677_v40  ;;  %v2020_v46 = vld [vmem:[%s3124_s6] ss:$0 sm:$0xff] }
 0x244   : > { %2213 = vmatpush3.bf16.msra.mxu0 %v1106_v45  ;;  %v1072_v49 = vadd.f32 %v2957_v59, %v1071_v48  ;;  %v2187_v50 = vpop.f32.mrb[30].mxu0  ;;  %v1606_v41 = vld [vmem:[#allocation2] sm:$0xff] }
 0x245   : > { %v1100_v51 = vmax.f32 %v1080_v47, 0.0  ;;  %v1083_v4 = vadd.f32 %v2187_v50, %v2957_v59  ;;  %v1074_v52 = vpop.f32.mrb[31].mxu0  ;;  %2224 = vmatprep.subr.bf16.mxu0 %v2594_v0 }
 0x246   : > { %v1098_v53 = vmax.f32 %v1072_v49, 0.0  ;;  %v1075_v54 = vadd.f32 %v2957_v59, %v1074_v52 }
 0x247   : > { %2203 = vmatmul.mubr.msk.bf16.vlgmr.msra.gmra.mrb[24].mxu1 %vm503_vm1, %v2889_v7  ;;  %v1101_v55 = vmax.f32 %v1083_v4, 0.0  ;;  %2215 = vmatmul.mubr.msk.bf16.vlgmr.msra.gmra.mrb[32].mxu0 %vm503_vm1, %v2905_v11  ;;  %v2427_v7 = vld [vmem:[%s3123_s5] sm:$0xff]  }
 0x248   : > { %2207 = vmatpush3.bf16.msra.mxu1 %v1105_v31  ;;  %2208 = vmatprep.mubr.msk.bf16.mxu1 %vm2595_vm0, %v2594_v0  ;;  %v1099_v56 = vmax.f32 %v1075_v54, 0.0 }
 0x249   : > { %2218 = vmatprep.subr.bf16.mxu1 %v2594_v0  ;;  %v1109_v57 = vpack.c.bf16 %v1101_v55, %v1100_v51  ;;  %2226 = vmatprep.mubr.msk.bf16.mxu0 %vm2595_vm0, %v2594_v0 }
 0x24a   : > { %v1108_v58 = vpack.c.bf16 %v1099_v56, %v1098_v53 }
 0x24c   : > { %2225 = vmatpush3.bf16.msra.mxu0 %v1108_v58 }
 0x24d   : > { %2236 = vmatprep.subr.bf16.mxu0 %v2427_v7 }
 0x24f   : > { %2209 = vmatmul.mubr.msk.bf16.vlgmr.msra.gmra.mrb[28].mxu1 %vm503_vm1, %v2893_v8  ;;  %2227 = vmatmul.mubr.msk.bf16.vlgmr.msra.gmra.mrb[36].mxu0 %vm503_vm1, %v2928_v16  ;;  %v2428_v8 = vld [vmem:[%s3123_s5 + $0x8] sm:$0xff]  }
 0x250   : > { %2219 = vmatpush3.bf16.msra.mxu1 %v1107_v44  ;;  %2220 = vmatprep.mubr.msk.bf16.mxu1 %vm2595_vm0, %v2594_v0  ;;  %v1680_v44 = vld [vmem:[%s3125_s7 + $0x18] sm:$0xff] }
 0x251   : > { %2230 = vmatprep.subr.bf16.mxu1 %v2594_v0  ;;  %2237 = vmatpush3.bf16.msra.mxu0 %v2427_v7  ;;  %v2337_v45 = vpack.c.bf16 %v1680_v44, %v1679_v42  ;;  %v1761_v44 = vld [vmem:[%s3127_s9] sm:$0xff] }
 0x252   : > { %2238 = vmatprep.subr.bf16.mxu0 %v2428_v8 }
 0x255   : > { %2239 = vmatpush3.bf16.msra.mxu0 %v2428_v8 }
 0x256   : > { %2333 = vmatprep.subr.bf16.mxu0 %v2596_v3 }
 0x257   : > { %2221 = vmatmul.mubr.msk.bf16.vlgmr.msra.gmra.mrb[32].mxu1 %vm503_vm1, %v2910_v12 }
 0x258   : > { %2231 = vmatpush3.bf16.msra.mxu1 %v1109_v57  ;;  %2232 = vmatprep.mubr.msk.bf16.mxu1 %vm2595_vm0, %v2594_v0 }
 0x259   : > { %2309 = vmatprep.subr.bf16.mxu1 %v2596_v3 }
 0x25f   : > { %2233 = vmatmul.mubr.msk.bf16.vlgmr.msra.gmra.mrb[36].mxu1 %vm503_vm1, %v2932_v17 }
 0x260   : > { %2288 = vmatprep.mubr.msk.f32.mxu1 %vm2595_vm0, %v2594_v0 }
 0x30a   : > { %v1144_v11 = vpop.f32.mrb[16].mxu1 }
 0x30b   : > { %v2192_v12 = vpop.f32.mrb[17].mxu1 }
 0x30c   : > { %v1147_v16 = vpop.f32.mrb[18].mxu1 }
 0x30d   : > { %v1438_v59 = vpack.c.bf16 %v1147_v16, %v1144_v11  ;;  %v2193_v17 = vpop.f32.mrb[19].mxu1 }
 0x30f   : > { %2240 = vmatprep.mubr.msk.bf16.mxu0 %vm964_vm2, %v1438_v59 }
 0x312   : > { %v1185_v60 = vpop.f32.mrb[20].mxu1 }
 0x313   : > { %v2198_v61 = vpop.f32.mrb[21].mxu1 }
 0x314   : > { %v1188_v62 = vpop.f32.mrb[22].mxu1 }
 0x315   : > { %v1439_v63 = vpack.c.bf16 %v1188_v62, %v1185_v60  ;;  %v2199_v1 = vpop.f32.mrb[23].mxu1 }
 0x317   : > { %2241 = vmatmul.mubr.msk.bf16.vlgmr.msra.gmra.mrb[40].mxu0 %vm964_vm2, %v1439_v63 }
 0x318   : > { %2335 = vmatpush3.bf16.msra.mxu0 %v2334_v43 }
 0x319   : > { %2336 = vmatprep.subr.bf16.mxu0 %v2596_v3 }
 0x31a   : > { %v1226_v2 = vpop.f32.mrb[24].mxu1  ;;  %v1308_v5 = vpop.f32.mrb[32].mxu0 }
 0x31b   : > { %v2204_v6 = vpop.f32.mrb[25].mxu1  ;;  %v2216_v9 = vpop.f32.mrb[33].mxu0 }
 0x31c   : > { %v1229_v10 = vpop.f32.mrb[26].mxu1  ;;  %v1311_v13 = vpop.f32.mrb[34].mxu0  ;;  %2338 = vmatpush3.bf16.msra.mxu0 %v2337_v45  ;;  %v1762_v45 = vld [vmem:[%s3127_s9 + $0x8] sm:$0xff] }
 0x31d   : > { %v1440_v14 = vpack.c.bf16 %v1229_v10, %v1226_v2  ;;  %v2205_v15 = vpop.f32.mrb[27].mxu1  ;;  %v1442_v18 = vpack.c.bf16 %v1311_v13, %v1308_v5  ;;  %v2217_v19 = vpop.f32.mrb[35].mxu0 }
 0x31f   : > { %2244 = vmatprep.mubr.msk.bf16.mxu0 %vm964_vm2, %v1440_v14 }
 0x322   : > { %v1267_v20 = vpop.f32.mrb[28].mxu1  ;;  %v1390_v21 = vpop.f32.mrb[36].mxu0 }
 0x323   : > { %v2210_v22 = vpop.f32.mrb[29].mxu1  ;;  %v2228_v23 = vpop.f32.mrb[37].mxu0 }
 0x324   : > { %v1270_v24 = vpop.f32.mrb[30].mxu1  ;;  %v1393_v25 = vpop.f32.mrb[38].mxu0 }
 0x325   : > { %v1441_v26 = vpack.c.bf16 %v1270_v24, %v1267_v20  ;;  %v2211_v27 = vpop.f32.mrb[31].mxu1  ;;  %v1444_v28 = vpack.c.bf16 %v1393_v25, %v1390_v21  ;;  %v2229_v29 = vpop.f32.mrb[39].mxu0 }
 0x327   : > { %2245 = vmatmul.mubr.msk.bf16.gmra.mrb[44].mxu0 %vm964_vm2, %v1441_v26 }
 0x328   : > { %2248 = vmatprep.mubr.msk.bf16.mxu0 %vm964_vm2, %v1442_v18 }
 0x32a   : > { %v1349_v30 = vpop.f32.mrb[32].mxu1 }
 0x32b   : > { %v2222_v31 = vpop.f32.mrb[33].mxu1 }
 0x32c   : > { %v1352_v32 = vpop.f32.mrb[34].mxu1 }
 0x32d   : > { %v1443_v33 = vpack.c.bf16 %v1352_v32, %v1349_v30  ;;  %v2223_v34 = vpop.f32.mrb[35].mxu1 }
 0x32f   : > { %2249 = vmatmul.mubr.msk.bf16.gmra.mrb[48].mxu0 %vm964_vm2, %v1443_v33 }
 0x330   : > { %2252 = vmatprep.mubr.msk.bf16.mxu0 %vm964_vm2, %v1444_v28 }
 0x332   : > { %v1431_v35 = vpop.f32.mrb[36].mxu1 }
 0x333   : > { %v2234_v36 = vpop.f32.mrb[37].mxu1 }
 0x334   : > { %v1434_v37 = vpop.f32.mrb[38].mxu1 }
 0x335   : > { %v1445_v38 = vpack.c.bf16 %v1434_v37, %v1431_v35  ;;  %v2235_v39 = vpop.f32.mrb[39].mxu1 }
 0x337   : > { %2253 = vmatmul.mubr.msk.bf16.gmra.mrb[52].mxu0 %vm964_vm2, %v1445_v38 }
 0x338   : > { %2299 = vmatprep.mubr.msk.f32.mxu0 %vm2595_vm0, %v2594_v0 }
 0x3ea   : > { %v2242_v47 = vpop.f32.mrb[40].mxu0 }
 0x3eb   : > { %v1536_v48 = vadd.f32 %v2242_v47, %v2020_v46  ;;  %v1527_v49 = vpop.f32.mrb[41].mxu0 }
 0x3ec   : > { %v1528_v50 = vadd.f32 %v2020_v46, %v1527_v49  ;;  %v2243_v51 = vpop.f32.mrb[42].mxu0  ;;  %v2033_v49 = vld [vmem:[%s3128_s10] ss:$0 sm:$0xff] }
 0x3ed   : > { %v1539_v4 = vadd.f32 %v2243_v51, %v2020_v46  ;;  %v1530_v52 = vpop.f32.mrb[43].mxu0  ;;  %v1592_v54 = vmax.f32 %v1536_v48, 0.0 }
 0x3ee   : > { %v1531_v53 = vadd.f32 %v2020_v46, %v1530_v52  ;;  %v1590_v56 = vmax.f32 %v1528_v50, 0.0 }
 0x3ef   : > { %v1593_v55 = vmax.f32 %v1539_v4, 0.0 }
 0x3f0   : > { %v1591_v57 = vmax.f32 %v1531_v53, 0.0 }
 0x3f1   : > { %v2313_v58 = vpack.c.bf16 %v1593_v55, %v1592_v54 }
 0x3f2   : > { %v2310_v7 = vpack.c.bf16 %v1591_v57, %v1590_v56 }
 0x3f4   : > { %2311 = vmatpush3.bf16.msra.mxu1 %v2310_v7 }
 0x3f5   : > { %2312 = vmatprep.subr.bf16.mxu1 %v2596_v3 }
 0x3f8   : > { %2314 = vmatpush3.bf16.msra.mxu1 %v2313_v58 }
 0x3f9   : > { %2315 = vmatprep.subr.bf16.mxu1 %v2596_v3 }
 0x3fa   : > { %v2246_v8 = vpop.f32.mrb[44].mxu0 }
 0x3fb   : > { %v1552_v11 = vadd.f32 %v2246_v8, %v2020_v46  ;;  %v1543_v12 = vpop.f32.mrb[45].mxu0 }
 0x3fc   : > { %v1544_v16 = vadd.f32 %v2020_v46, %v1543_v12  ;;  %v2247_v59 = vpop.f32.mrb[46].mxu0 }
 0x3fd   : > { %v1555_v17 = vadd.f32 %v2247_v59, %v2020_v46  ;;  %v1546_v60 = vpop.f32.mrb[47].mxu0  ;;  %v1596_v62 = vmax.f32 %v1552_v11, 0.0 }
 0x3fe   : > { %v1547_v61 = vadd.f32 %v2020_v46, %v1546_v60  ;;  %v1594_v1 = vmax.f32 %v1544_v16, 0.0 }
 0x3ff   : > { %v1597_v63 = vmax.f32 %v1555_v17, 0.0 }
 0x400   : > { %v1595_v2 = vmax.f32 %v1547_v61, 0.0 }
 0x401   : > { %v2319_v5 = vpack.c.bf16 %v1597_v63, %v1596_v62 }
 0x402   : > { %v2316_v6 = vpack.c.bf16 %v1595_v2, %v1594_v1  ;;  %v2250_v9 = vpop.f32.mrb[48].mxu0 }
 0x403   : > { %v1568_v10 = vadd.f32 %v2250_v9, %v2020_v46  ;;  %v1559_v13 = vpop.f32.mrb[49].mxu0 }
 0x404   : > { %v1560_v14 = vadd.f32 %v2020_v46, %v1559_v13  ;;  %v2251_v15 = vpop.f32.mrb[50].mxu0  ;;  %2317 = vmatpush3.bf16.msra.mxu1 %v2316_v6 }
 0x405   : > { %v1571_v18 = vadd.f32 %v2251_v15, %v2020_v46  ;;  %v1562_v19 = vpop.f32.mrb[51].mxu0  ;;  %2318 = vmatprep.subr.bf16.mxu1 %v2596_v3  ;;  %v1600_v21 = vmax.f32 %v1568_v10, 0.0 }
 0x406   : > { %v1563_v20 = vadd.f32 %v2020_v46, %v1562_v19  ;;  %v1598_v23 = vmax.f32 %v1560_v14, 0.0 }
 0x407   : > { %v1601_v22 = vmax.f32 %v1571_v18, 0.0 }
 0x408   : > { %v1599_v24 = vmax.f32 %v1563_v20, 0.0  ;;  %2320 = vmatpush3.bf16.msra.mxu1 %v2319_v5 }
 0x409   : > { %v2325_v25 = vpack.c.bf16 %v1601_v22, %v1600_v21  ;;  %2321 = vmatprep.subr.bf16.mxu1 %v2596_v3 }
 0x40a   : > { %v2322_v26 = vpack.c.bf16 %v1599_v24, %v1598_v23  ;;  %v2254_v27 = vpop.f32.mrb[52].mxu0 }
 0x40b   : > { %v1584_v28 = vadd.f32 %v2254_v27, %v2020_v46  ;;  %v1575_v29 = vpop.f32.mrb[53].mxu0 }
 0x40c   : > { %v1576_v30 = vadd.f32 %v2020_v46, %v1575_v29  ;;  %v2255_v31 = vpop.f32.mrb[54].mxu0  ;;  %2323 = vmatpush3.bf16.msra.mxu1 %v2322_v26 }
 0x40d   : > { %v1587_v32 = vadd.f32 %v2255_v31, %v2020_v46  ;;  %v1578_v33 = vpop.f32.mrb[55].mxu0  ;;  %2324 = vmatprep.subr.bf16.mxu1 %v2596_v3  ;;  %v1604_v35 = vmax.f32 %v1584_v28, 0.0 }
 0x40e   : > { %v1579_v34 = vadd.f32 %v2020_v46, %v1578_v33  ;;  %v1602_v37 = vmax.f32 %v1576_v30, 0.0  ;;  %v2340_v46 = vpack.c.bf16 %v1762_v45, %v1761_v44 }
 0x40f   : > { %v1605_v36 = vmax.f32 %v1587_v32, 0.0 }
 0x410   : > { %v1603_v38 = vmax.f32 %v1579_v34, 0.0  ;;  %2326 = vmatpush3.bf16.msra.mxu1 %v2325_v25 }
 0x411   : > { %v2331_v39 = vpack.c.bf16 %v1605_v36, %v1604_v35  ;;  %2327 = vmatprep.subr.bf16.mxu1 %v2596_v3 }
 0x412   : > { %v2328_v40 = vpack.c.bf16 %v1603_v38, %v1602_v37 }
 0x414   : > { %2329 = vmatpush3.bf16.msra.mxu1 %v2328_v40 }
 0x415   : > { %2330 = vmatprep.subr.bf16.mxu1 %v2596_v3 }
 0x418   : > { %2332 = vmatpush3.bf16.msra.mxu1 %v2331_v39 }
 0x419   : > { %2339 = vmatprep.subr.bf16.mxu1 %v2596_v3  ;;  %v2031_v3 = vld [vmem:[%s3126_s8] ss:$0 sm:$0xff] }
 0x41b   : > { %2289 = vmatmul.mubr.f32.vlgmr.msra.gmra.mrb[40].mxu1 %v1606_v41 }
 0x41c   : > { %2306 = vmatprep.mubr.msk.f32.mxu1 %vm2595_vm0, %v2594_v0  ;;  %2341 = vmatpush3.bf16.msra.mxu1 %v2340_v46 }
 0x4ee   : > { %v1673_v42 = vpop.f32.mrb[40].mxu1 }
 0x4ef   : > { %v2290_v43 = vpop.f32.mrb[41].mxu1  ;;  %2300 = vmatmul.mubr.msk.f32.vlgmr.msra.gmra.mrb[56].mxu0 %vm964_vm2, %v1673_v42 }
 0x5c2   : > { %v1757_v0 = vpop.f32.mrb[56].mxu0 }
 0x5c3   : > { %v1758_v47 = vadd.f32 %v2031_v3, %v1757_v0  ;;  %v2301_v48 = vpop.f32.mrb[57].mxu0 }
 0x5c5   : > { %2307 = vmatmul.mubr.msk.f32.vlgmr.msra.gmra.mrb[42].mxu1 %vm503_vm1, %v1758_v47 }
 0x698   : > { %v1839_v50 = vpop.f32.mrb[42].mxu1 }
 0x699   : > { %v1840_v51 = vadd.f32 %v2033_v49, %v1839_v50  ;;  %v2308_v4 = vpop.f32.mrb[43].mxu1 }
 0x69b   : > { %1843 = vst [vmem:[%s456_s25] sm:$0xff] %v1840_v51 }
 0x69c   : > { %2530 = shalt.err (!%p2527_p10)
}
 0x69d   : > { %s2531_s15 = scalar_lea.hbm %s3074_s29, 128  ;;  %s2535_s19 = scalar_lea.hbm %s3129_s11, 256 }
 0x69e   : > { %p2532_p8 = scmp.ne.s32.totalorder %s3074_s29, %s2531_s15  ;;  %p2536_p6 = scmp.lt.u32.totalorder %s3074_s29, %s3129_s11 }
 0x69f   : > { %p2537_p12 = scmp.lt.u32.totalorder %s2535_s19, %s2531_s15  ;;  %p2539_p9 = scmp.lt.u32.totalorder %s2531_s15, %s3074_s29 }
 0x6a0   : > { %p2533_p7 = pnand %p2532_p8, %p3158_p1 }
 0x6a1   : > { %p2538_p0 = por %p2537_p12, %p2536_p6 }
 0x6a2   : > { %p2534_p4 = pneg %p2533_p7 }
 0x6a3   : > { %p2540_p11 = por %p2539_p9, %p2538_p0 }
 0x6a5   : > { %p2541_p13 = pnand %p2540_p11, %p2534_p4 }
 0x6a7   : > { %2544 = shalt.err (!%p2541_p13)
}
 0x6a8   : > { %2350 = dma.vmem_to_hbm [thread:$0]  (%p3158_p1), %s3076_s26, 128, %s3074_s29, %s1845_s13  }
 0x6a9 PF: > { %s1870_s21 = sand.u32 1, %s2575_s17   ;;  %p3159_p3 = scmp.ne.s32.totalorder %s3147_s12, 0 }
 0x6aa   : > { %p3160_p2 = scmp.ge.s32.totalorder %s2587_s20, 2  ;;  %s1871_s24 = scalar_lea.sflag [#allocation4], %s1870_s21 }
 0x6ac   : > { %p2364_p5 = pnand %p3160_p2, %p3159_p3 }
 0x6ae   : > { %2570 = dma.done.wait (!%p2364_p5), %s1871_s24, 128  }
 0x6af   : > { %2572 = vsyncadd (!%p2364_p5), %s1871_s24, 4294967168  ;;  %s3161_s20 = sld [smem:[#allocation13_spill]]  ;;  %s3162_s28 = sld [smem:[#allocation12_spill]] }
 0x6b0   : > { %s3163_s19 = sld [smem:[#allocation14_spill]]  ;;  %s3164_s17 = smov %s2579_s18 }
 0x6b5   : > { %p25_p10 = scmp.ge.s32.totalorder %s3161_s20, 4   ;;  %s3165_s18 = smov %s3162_s28 }
 0x6b7   :  { %27 = sbr.rel (!%p25_p10) target bundleno = 8 (0x8), region = 125 }
 0x6be   :  { %1876 = vsyncpa [#allocation3], 1 }
 0x6bf   :  { %1878 = vsyncpa [#allocation3 + $0x1], 1 }
 0x6c0   :  { %1879 = vsyncpa [#allocation6], 1 }
 0x6c1   :  { %1881 = vsyncpa [#allocation6 + $0x1], 1 }
 0x6c2   :  { %1882 = vsyncpa [#allocation4], 1 }
 0x6c3   :  { %1884 = vsyncpa [#allocation4 + $0x1], 1 }

</bundles_post_ra>
